<compile_context>
chip_gen: v7x
topology: tpu7x:2x2x1
jax: 0.10.0
libtpu: 0.0.40
codegen_flags: <defaults>
</compile_context>

<pallas_src>
import functools

import jax
import jax.numpy as jnp
import numpy as np
from jax.experimental import pallas as pl
from jax.experimental.pallas import tpu as pltpu


# ----------------------------------------------------------------------------- kernel ---
def _grouped_linear_kernel(
    # scalar-prefetch refs (SMEM)
    block_ids_ref,   # (num_items,)  row-block index of work item i
    group_ids_ref,   # (num_items,)  network index of work item i
    first_ref,       # (num_items,)  1 if this is the first work item touching the block
    group_offs_ref,  # (num_networks + 1,) cumulative row offsets per network
    # tensor refs (VMEM)
    xt_ref,          # (in_features, TILE_ROWS)        rows on lanes
    wt_ref,          # (1, out_features, in_features)  pre-transposed weights of this net
    *rest,           # [bt_ref: (num_networks, out_features, 1)], ot_ref: (out, TILE_ROWS)
    tile_rows,
    with_bias,
):
    if with_bias:
        bt_ref, ot_ref = rest
    else:
        (ot_ref,) = rest

    i = pl.program_id(0)
    g = group_ids_ref[i]
    blk = block_ids_ref[i]

    # Columns (== original rows) of this tile that belong to network g.
    col0 = blk * tile_rows
    cols = col0 + jax.lax.broadcasted_iota(jnp.int32, (1, tile_rows), 1)
    g_lo = group_offs_ref[g]
    g_hi = group_offs_ref[g + 1]
    col_mask = (cols >= g_lo) & (cols < g_hi)                        # (1, tile_rows)

    # Lane-dense MXU matmul: (out, in) @ (in, tile_rows) -> (out, tile_rows), f32 acc.
    contrib = jnp.dot(wt_ref[0], xt_ref[...], preferred_element_type=jnp.float32)

    if with_bias:
        contrib = contrib + bt_ref[g].astype(jnp.float32)            # (out, 1) lane-bcast

    # Mask AFTER the matmul: one fused select, off the MXU critical path; foreign columns
    # become exact zeros so later accumulation into the same tile is exact.
    masked = jnp.where(col_mask, contrib, 0.0).astype(ot_ref.dtype)

    @pl.when(first_ref[i] != 0)
    def _store():                    # common case: tile visited once -> single store
        ot_ref[...] = masked

    @pl.when(first_ref[i] == 0)
    def _accum():                    # tile spans several networks -> accumulate
        ot_ref[...] += masked


# ----------------------------------------------------------------- metadata (host-side) ---
def _build_metadata(batch_sizes, total, tile_rows):
    """Static work-item list: one item per (row-tile, network) pair with nonzero overlap."""
    n = len(batch_sizes)
    offsets = np.zeros(n + 1, dtype=np.int32)
    offsets[1:] = np.cumsum(np.asarray(batch_sizes, dtype=np.int64)).astype(np.int32)

    num_blocks = max(1, -(-total // tile_rows))  # cdiv
    block_ids, group_ids, first_flags = [], [], []
    for t in range(num_blocks):
        r0 = t * tile_rows
        r1 = min(r0 + tile_rows, total)
        first = True
        for net in range(n):
            gs, ge = int(offsets[net]), int(offsets[net + 1])
            if ge > gs and ge > r0 and gs < r1:       # nonzero overlap, skip empty networks
                block_ids.append(t)
                group_ids.append(net)
                first_flags.append(1 if first else 0)
                first = False
        if first:  # tile with no valid rows (e.g. fully padded) still gets zero-filled
            block_ids.append(t)
            group_ids.append(0)
            first_flags.append(1)

    return (np.asarray(block_ids, np.int32),
            np.asarray(group_ids, np.int32),
            np.asarray(first_flags, np.int32),
            offsets)


# ------------------------------------------------------------------------ functional API ---
def multi_network_linear(x, weights, biases, batch_size_per_network, *,
                         tile_rows=None, compute_dtype=None):
    """Grouped per-network linear: out[rows of net n] = x[rows of net n] @ W[n] (+ b[n]).

    compute_dtype=jnp.bfloat16 enables the bf16 MXU path (f32 accumulation); results then
    differ from the f32 reference by bf16 rounding.  Default keeps the input dtype.
    """
    bszs = [int(b) for b in np.asarray(batch_size_per_network).reshape(-1)]
    num_networks, in_features, out_features = weights.shape
    assert len(bszs) == num_networks
    total = int(sum(bszs))
    assert x.shape == (total, in_features)

    out_dtype = x.dtype
    if total == 0:
        return jnp.zeros((0, out_features), dtype=out_dtype)

    cdt = out_dtype if compute_dtype is None else compute_dtype

    # Row-tile size: multiple of 128 (rows map to lanes), sized against the batch
    # distribution so masked redundancy stays bounded when per-network batches are small.
    if tile_rows is None:
        n_active = max(1, sum(1 for b in bszs if b > 0))
        avg = max(1, total // n_active)
        tile_rows = int(min(2048, max(256, 128 * (-(-avg // 128)))))
    else:
        tile_rows = max(128, (int(tile_rows) // 128) * 128)

    total_padded = -(-total // tile_rows) * tile_rows

    # ---- wrapper-side layout plumbing (lane-dense rows) ----
    xt = jnp.pad(jnp.transpose(x.astype(cdt)),               # (in_features, total_padded)
                 ((0, 0), (0, total_padded - total)))
    wt = jnp.swapaxes(weights.astype(cdt), 1, 2)              # (num_networks, out, in)

    with_bias = biases is not None
    if with_bias:
        bt = biases.astype(jnp.float32).reshape(num_networks, out_features, 1)

    block_ids, group_ids, first_flags, offsets = _build_metadata(bszs, total, tile_rows)
    num_items = int(block_ids.shape[0])

    kernel = functools.partial(_grouped_linear_kernel,
                               tile_rows=tile_rows, with_bias=with_bias)

    # index_maps receive (grid_idx, *scalar_prefetch_refs)
    def x_map(i, bid, gid, fst, off):
        return (0, bid[i])

    def w_map(i, bid, gid, fst, off):
        return (gid[i], 0, 0)

    def b_map(i, bid, gid, fst, off):
        return (0, 0, 0)          # constant -> fetched once, resident for the whole kernel

    def o_map(i, bid, gid, fst, off):
        return (0, bid[i])

    in_specs = [
        pl.BlockSpec((in_features, tile_rows), x_map),
        pl.BlockSpec((1, out_features, in_features), w_map),
    ]
    operands = [jnp.asarray(block_ids), jnp.asarray(group_ids),
                jnp.asarray(first_flags), jnp.asarray(offsets),
                xt, wt]
    if with_bias:
        in_specs.append(pl.BlockSpec((num_networks, out_features, 1), b_map))
        operands.append(bt)

    out_t = pl.pallas_call(
        kernel,
        out_shape=jax.ShapeDtypeStruct((out_features, total_padded), out_dtype),
        grid_spec=pltpu.PrefetchScalarGridSpec(
            num_scalar_prefetch=4,
            grid=(num_items,),
            in_specs=in_specs,
            out_specs=pl.BlockSpec((out_features, tile_rows), o_map),
        ),
        compiler_params=pltpu.CompilerParams(
            # Work items of the same row tile revisit the same output block, so the axis
            # must stay "arbitrary" (single-writer accumulator).
            dimension_semantics=("arbitrary",),
        ),
    )(*operands)

    return jnp.transpose(out_t[:, :total])                    # (total, out_features)


# ----------------------------------------------------------------------------- module ---
class CudaMultiNetworkLinear:
    """JAX/Pallas port of the PyTorch CudaMultiNetworkLinear forward pass."""

    def __init__(self, num_networks, in_features, out_features, biases=False, weights=True):
        self.num_networks = num_networks
        self.in_features = in_features
        self.out_features = out_features
        self._zero_bias = biases is False
        self.biases = (jnp.zeros((num_networks, out_features), jnp.float32)
                       if biases is False else None)
        self.weights = (jnp.ones((num_networks, in_features, out_features), jnp.float32)
                        if weights is False else None)
        # TODO(synk): group_limits / MAGMA aux indices are CUDA-only scheduling handles;
        # the scalar-prefetch work-item list replaces them on TPU.

    def forward(self, x, weights, biases, batch_size_per_network):
        if weights is None:
            weights = self.weights.astype(x.dtype)
        if biases is None:
            # Module's biases=False ctor stores zeros; mathematically identical to the
            # bias-free kernel path, so skip the bias operand entirely.
            biases = None if self._zero_bias else self.biases
        return multi_network_linear(x, weights, biases, batch_size_per_network)

    __call__ = forward


# -------------------------------------------------------------------------- verification ---
def _reference(x, weights, biases, batch_sizes):
    outs, off = [], 0
    for n, b in enumerate(batch_sizes):
        o = x[off:off + b] @ weights[n]
        if biases is not None:
            o = o + biases[n][None, :]
        outs.append(o)
        off += b
    return jnp.concatenate(outs, axis=0)


if __name__ == "__main__":
    key = jax.random.PRNGKey(0)
    k_x, k_w, k_b, k_x2, k_x3 = jax.random.split(key, 5)

    num_networks, in_features, out_features = 4, 32, 16
    w = jax.random.normal(k_w, (num_networks, in_features, out_features), jnp.float32) * 0.1
    b = jax.random.normal(k_b, (num_networks, out_features), jnp.float32) * 0.1

    # --- Test A: module path, explicit weights + biases, single (padded) row tile. ---
    bszs_a = [5, 8, 3, 12]
    total_a = sum(bszs_a)
    x_a = jax.random.normal(k_x, (total_a, in_features), dtype=jnp.float32)
    layer = CudaMultiNetworkLinear(num_networks, in_features, out_features,
                                   biases=False, weights=True)
    out_a = jax.block_until_ready(layer(x_a, w, b, bszs_a))
    ref_a = _reference(x_a, w, b, bszs_a)
    assert out_a.shape == (total_a, out_features)
    assert jnp.allclose(out_a, ref_a, atol=1e-4, rtol=1e-4), "mismatch (module, with bias)"

    # --- Test B: functional path; several row tiles, group boundaries inside tiles,
    #             a partial (padded) last tile, and an empty network. ---
    bszs_b = [40, 130, 0, 80]
    total_b = sum(bszs_b)
    x_b = jax.random.normal(k_x2, (total_b, in_features), dtype=jnp.float32)
    out_b = jax.block_until_ready(multi_network_linear(x_b, w, b, bszs_b, tile_rows=128))
    ref_b = _reference(x_b, w, b, bszs_b)
    assert out_b.shape == (total_b, out_features)
    assert jnp.allclose(out_b, ref_b, atol=1e-4, rtol=1e-4), "mismatch (multi-tile, partial)"

    # --- Test C: biases=None -> module's zero-bias ctor -> bias-free kernel path. ---
    out_c = jax.block_until_ready(layer(x_a, w, None, bszs_a))
    ref_c = _reference(x_a, w, None, bszs_a)
    assert jnp.allclose(out_c, ref_c, atol=1e-4, rtol=1e-4), "mismatch (zero-bias path)"

    # --- Test D: bf16 compute path (halved HBM stream, bf16 MXU, f32 accumulation). ---
    bszs_d = [300, 200, 100, 24]
    total_d = sum(bszs_d)
    x_d = jax.random.normal(k_x3, (total_d, in_features), dtype=jnp.float32)
    out_d = jax.block_until_ready(
        multi_network_linear(x_d, w, b, bszs_d, tile_rows=256, compute_dtype=jnp.bfloat16))
    ref_d = _reference(x_d, w, b, bszs_d)
    assert out_d.shape == (total_d, out_features)
    assert jnp.allclose(out_d, ref_d, atol=3e-2, rtol=3e-2), "mismatch (bf16 compute path)"

    print("KERNEL_OK")
</pallas_src>

<mosaic_0001>
module attributes {stable_mosaic.version = 11 : i64} {
  func.func @_grouped_linear_kernel(%arg0: i32, %arg1: memref<4xi32, #tpu.memory_space<smem>>, %arg2: memref<4xi32, #tpu.memory_space<smem>>, %arg3: memref<4xi32, #tpu.memory_space<smem>>, %arg4: memref<5xi32, #tpu.memory_space<smem>>, %arg5: memref<32x256xf32, #tpu.memory_space<vmem>>, %arg6: memref<1x16x32xf32, #tpu.memory_space<vmem>>, %arg7: memref<4x16x1xf32, #tpu.memory_space<vmem>>, %arg8: memref<16x256xf32, #tpu.memory_space<vmem>>) attributes {dimension_semantics = [#tpu.dimension_semantics<arbitrary>], iteration_bounds = array<i64: 4>, scalar_prefetch = 4 : i64, scratch_operands = 0 : i64, tpu.core_type = #tpu.core_type<tc>, window_params = [{transform_indices = @transform_0, window_bounds = array<i64: 32, 256>}, {transform_indices = @transform_1, window_bounds = array<i64: 1, 16, 32>}, {pipeline_mode = #tpu.pipeline_mode<synchronous>, transform_indices = @transform_2, window_bounds = array<i64: 4, 16, 1>}, {transform_indices = @transform_3, window_bounds = array<i64: 16, 256>}]} {
    %0 = arith.index_cast %arg0 : i32 to index
    %1 = memref.load %arg2[%0] : memref<4xi32, #tpu.memory_space<smem>>
    %2 = arith.index_cast %arg0 : i32 to index
    %3 = memref.load %arg1[%2] : memref<4xi32, #tpu.memory_space<smem>>
    %c256_i32 = arith.constant 256 : i32
    %4 = arith.muli %3, %c256_i32 : i32
    %5 = tpu.iota {dimensions = array<i32: 1>} : vector<1x256xi32>
    %6 = vector.broadcast %4 : i32 to vector<1x256xi32>
    %7 = arith.addi %6, %5 : vector<1x256xi32>
    %8 = arith.index_cast %1 : i32 to index
    %9 = memref.load %arg4[%8] : memref<5xi32, #tpu.memory_space<smem>>
    %c1_i32 = arith.constant 1 : i32
    %10 = arith.addi %1, %c1_i32 : i32
    %11 = arith.index_cast %10 : i32 to index
    %12 = memref.load %arg4[%11] : memref<5xi32, #tpu.memory_space<smem>>
    %13 = vector.broadcast %9 : i32 to vector<1x256xi32>
    %14 = arith.cmpi sge, %7, %13 : vector<1x256xi32>
    %15 = vector.broadcast %12 : i32 to vector<1x256xi32>
    %16 = arith.cmpi slt, %7, %15 : vector<1x256xi32>
    %17 = arith.andi %14, %16 : vector<1x256xi1>
    %c0 = arith.constant 0 : index
    %c0_0 = arith.constant 0 : index
    %c0_1 = arith.constant 0 : index
    %18 = vector.load %arg6[%c0, %c0_0, %c0_1] : memref<1x16x32xf32, #tpu.memory_space<vmem>>, vector<1x16x32xf32>
    %19 = vector.shape_cast %18 : vector<1x16x32xf32> to vector<16x32xf32>
    %c0_2 = arith.constant 0 : index
    %c0_3 = arith.constant 0 : index
    %20 = vector.load %arg5[%c0_2, %c0_3] : memref<32x256xf32, #tpu.memory_space<vmem>>, vector<32x256xf32>
    %cst = arith.constant dense<0.000000e+00> : vector<16x256xf32>
    %21 = tpu.matmul %19, %20, %cst {dimension_numbers = #tpu.dot_dimension_numbers<[1], [0], [0], [1], [0, 0, 1, 1], [], []>} : vector<16x32xf32>, vector<32x256xf32>, vector<16x256xf32> -> vector<16x256xf32>
    %22 = arith.index_cast %1 : i32 to index
    %c0_4 = arith.constant 0 : index
    %c0_5 = arith.constant 0 : index
    %23 = vector.load %arg7[%22, %c0_4, %c0_5] : memref<4x16x1xf32, #tpu.memory_space<vmem>>, vector<1x16x1xf32>
    %24 = vector.shape_cast %23 : vector<1x16x1xf32> to vector<16x1xf32>
    %25 = vector.broadcast %24 : vector<16x1xf32> to vector<16x256xf32>
    %26 = arith.addf %21, %25 : vector<16x256xf32>
    %cst_6 = arith.constant 0.000000e+00 : f32
    %27 = vector.shape_cast %17 : vector<1x256xi1> to vector<1x256xi1>
    %28 = vector.broadcast %27 : vector<1x256xi1> to vector<16x256xi1>
    %29 = vector.broadcast %cst_6 : f32 to vector<16x256xf32>
    %30 = arith.select %28, %26, %29 : vector<16x256xi1>, vector<16x256xf32>
    %31 = arith.index_cast %arg0 : i32 to index
    %32 = memref.load %arg3[%31] : memref<4xi32, #tpu.memory_space<smem>>
    %c0_i32 = arith.constant 0 : i32
    %33 = arith.cmpi ne, %32, %c0_i32 : i32
    %34 = arith.extui %33 : i1 to i32
    %c0_i32_7 = arith.constant 0 : i32
    %35 = arith.cmpi ne, %34, %c0_i32_7 : i32
    scf.if %35 {
      %c0_10 = arith.constant 0 : index
      %c0_11 = arith.constant 0 : index
      %41 = vector.load %arg8[%c0_10, %c0_11] : memref<16x256xf32, #tpu.memory_space<vmem>>, vector<16x256xf32>
      tpu.vector_store %arg8[%c0_10, %c0_11], %30 {strides = array<i32>} : memref<16x256xf32, #tpu.memory_space<vmem>>, vector<16x256xf32>,
    } else {
    }
    %36 = arith.index_cast %arg0 : i32 to index
    %37 = memref.load %arg3[%36] : memref<4xi32, #tpu.memory_space<smem>>
    %c0_i32_8 = arith.constant 0 : i32
    %38 = arith.cmpi eq, %37, %c0_i32_8 : i32
    %39 = arith.extui %38 : i1 to i32
    %c0_i32_9 = arith.constant 0 : i32
    %40 = arith.cmpi ne, %39, %c0_i32_9 : i32
    scf.if %40 {
      %c0_10 = arith.constant 0 : index
      %c0_11 = arith.constant 0 : index
      %41 = vector.load %arg8[%c0_10, %c0_11] : memref<16x256xf32, #tpu.memory_space<vmem>>, vector<16x256xf32>
      %42 = arith.addf %41, %30 : vector<16x256xf32>
      %c0_12 = arith.constant 0 : index
      %c0_13 = arith.constant 0 : index
      %43 = vector.load %arg8[%c0_12, %c0_13] : memref<16x256xf32, #tpu.memory_space<vmem>>, vector<16x256xf32>
      tpu.vector_store %arg8[%c0_12, %c0_13], %42 {strides = array<i32>} : memref<16x256xf32, #tpu.memory_space<vmem>>, vector<16x256xf32>,
    } else {
    }
    return
  }
  func.func @transform_0(%arg0: i32, %arg1: memref<4xi32, #tpu.memory_space<smem>>, %arg2: memref<4xi32, #tpu.memory_space<smem>>, %arg3: memref<4xi32, #tpu.memory_space<smem>>, %arg4: memref<5xi32, #tpu.memory_space<smem>>) -> (i32, i32) {
    %0 = arith.index_cast %arg0 : i32 to index
    %1 = memref.load %arg1[%0] : memref<4xi32, #tpu.memory_space<smem>>
    %c0_i32 = arith.constant 0 : i32
    %c0_i32_0 = arith.constant 0 : i32
    return %c0_i32, %1 : i32, i32
  }
  func.func @transform_1(%arg0: i32, %arg1: memref<4xi32, #tpu.memory_space<smem>>, %arg2: memref<4xi32, #tpu.memory_space<smem>>, %arg3: memref<4xi32, #tpu.memory_space<smem>>, %arg4: memref<5xi32, #tpu.memory_space<smem>>) -> (i32, i32, i32) {
    %0 = arith.index_cast %arg0 : i32 to index
    %1 = memref.load %arg2[%0] : memref<4xi32, #tpu.memory_space<smem>>
    %c0_i32 = arith.constant 0 : i32
    %c0_i32_0 = arith.constant 0 : i32
    %c0_i32_1 = arith.constant 0 : i32
    return %1, %c0_i32, %c0_i32_0 : i32, i32, i32
  }
  func.func @transform_2(%arg0: i32, %arg1: memref<4xi32, #tpu.memory_space<smem>>, %arg2: memref<4xi32, #tpu.memory_space<smem>>, %arg3: memref<4xi32, #tpu.memory_space<smem>>, %arg4: memref<5xi32, #tpu.memory_space<smem>>) -> (i32, i32, i32) {
    %c0_i32 = arith.constant 0 : i32
    %c0_i32_0 = arith.constant 0 : i32
    %c0_i32_1 = arith.constant 0 : i32
    %c0_i32_2 = arith.constant 0 : i32
    return %c0_i32, %c0_i32_0, %c0_i32_1 : i32, i32, i32
  }
  func.func @transform_3(%arg0: i32, %arg1: memref<4xi32, #tpu.memory_space<smem>>, %arg2: memref<4xi32, #tpu.memory_space<smem>>, %arg3: memref<4xi32, #tpu.memory_space<smem>>, %arg4: memref<5xi32, #tpu.memory_space<smem>>) -> (i32, i32) {
    %0 = arith.index_cast %arg0 : i32 to index
    %1 = memref.load %arg1[%0] : memref<4xi32, #tpu.memory_space<smem>>
    %c0_i32 = arith.constant 0 : i32
    %c0_i32_0 = arith.constant 0 : i32
    return %c0_i32, %1 : i32, i32
  }
}

</mosaic_0001>

<bundles_post_ra>
// kernel: tpu_custom_call.1
= control target key start
LH: loop header
LB: loop body
LE: loop exit
PB: predicated region body
PF: predicated region fallthrough
CT: control target
= control target key end

     0   :  { %s1130_s0 = inlined_call_operand.vmem [shape: s32[4], index: 0, kind: input, shape index: {}]   ;;  %s1131_s4 = inlined_call_operand.vmem [shape: f32[32,256], index: 4, kind: input, shape index: {}]   ;;  %s1132_s5 = inlined_call_operand.hbm [shape: f32[4,16,32], index: 5, kind: input, shape index: {}]   ;;  %s1133_s6 = inlined_call_operand.vmem [shape: f32[4,16,1], index: 6, kind: input, shape index: {}]   ;;  %s1134_s7 = inlined_call_operand.hbm [shape: f32[16,256], index: 7, kind: output, shape index: {}]   ;;  %s1135_s1 = inlined_call_operand.vmem [shape: s32[4], index: 1, kind: input, shape index: {}]   ;;  %s1136_s2 = inlined_call_operand.vmem [shape: s32[4], index: 2, kind: input, shape index: {}]   ;;  %s1137_s3 = inlined_call_operand.vmem [shape: s32[5], index: 3, kind: input, shape index: {}]  }
   0x1   :  { %s12_s26 = sshll.u32 %s1130_s0, 4  ;;  %s16_s29 = sshll.u32 %s1135_s1, 4  ;;  %s13_s26 = int_to_ptr.vmem [resolvable:$true] %s12_s26  ;;  %s17_s29 = int_to_ptr.vmem [resolvable:$true] %s16_s29 }
   0x2   :  { %s635_s30 = scalar_lea.vmem %s13_s26, 16  ;;  %p640_p1 = scmp.lt.s32.totalorder %s13_s26, %s13_s26 }
   0x3   :  { %p636_p0 = scmp.ne.s32.totalorder %s13_s26, %s635_s30  ;;  %p641_p2 = scmp.lt.s32.totalorder %s635_s30, %s635_s30 }
   0x5   :  { %p642_p3 = por %p641_p2, %p640_p1 }
   0x7   :  { %p643_p4 = pnand %p642_p3, %p636_p0 }
   0x9   :  { %646 = shalt.err (!%p643_p4)  }
   0xa   :  { %s807_s8 = smov [#allocation3]   ;;  %s647_s9 = scalar_lea.vmem %s17_s29, 16 }
   0xb   :  { %15 = dma.vmem_to_smem %s13_s26, 16, %s807_s8, [#allocation2] }
   0xc   :  { %p648_p5 = scmp.ne.s32.totalorder %s17_s29, %s647_s9  ;;  %p652_p6 = scmp.lt.s32.totalorder %s17_s29, %s17_s29 }
   0xd   :  { %p653_p7 = scmp.lt.s32.totalorder %s647_s9, %s647_s9 }
   0xf   :  { %p654_p8 = por %p653_p7, %p652_p6 }
  0x11   :  { %p655_p9 = pnand %p654_p8, %p648_p5 }
  0x13   :  { %658 = shalt.err (!%p655_p9)  }
  0x14   :  { %s808_s0 = smov [#allocation4]   ;;  %s20_s11 = sshll.u32 %s1136_s2, 4  ;;  %s21_s11 = int_to_ptr.vmem [resolvable:$true] %s20_s11 }
  0x15   :  { %19 = dma.vmem_to_smem %s17_s29, 16, %s808_s0, [#allocation2] }
  0x16   :  { %s24_s14 = sshll.u32 %s1137_s3, 4  ;;  %s659_s15 = scalar_lea.vmem %s21_s11, 16  ;;  %s25_s14 = int_to_ptr.vmem [resolvable:$true] %s24_s14 }
  0x17   :  { %p660_p10 = scmp.ne.s32.totalorder %s21_s11, %s659_s15  ;;  %p664_p11 = scmp.lt.s32.totalorder %s21_s11, %s21_s11 }
  0x18   :  { %p665_p12 = scmp.lt.s32.totalorder %s659_s15, %s659_s15 }
  0x1a   :  { %p666_p13 = por %p665_p12, %p664_p11 }
  0x1c   :  { %p667_p0 = pnand %p666_p13, %p660_p10 }
  0x1e   :  { %670 = shalt.err (!%p667_p0)  }
  0x1f   :  { %s809_s16 = smov [#allocation5]   ;;  %s671_s17 = scalar_lea.vmem %s25_s14, 16 }
  0x20   :  { %23 = dma.vmem_to_smem %s21_s11, 16, %s809_s16, [#allocation2] }
  0x21   :  { %p672_p1 = scmp.ne.s32.totalorder %s25_s14, %s671_s17  ;;  %p676_p2 = scmp.lt.s32.totalorder %s25_s14, %s25_s14 }
  0x22   :  { %p677_p3 = scmp.lt.s32.totalorder %s671_s17, %s671_s17 }
  0x24   :  { %p678_p4 = por %p677_p3, %p676_p2 }
  0x26   :  { %p679_p5 = pnand %p678_p4, %p672_p1 }
  0x28   :  { %682 = shalt.err (!%p679_p5)  }
  0x29   :  { %s810_s2 = smov [#allocation6]  }
  0x2a   :  { %27 = dma.vmem_to_smem %s25_s14, 16, %s810_s2, [#allocation2] }
  0x2b   :  { %769 = dma.done.wait [#allocation2], 64 }
  0x2c   :  { %770 = vsyncadd [#allocation2], 4294967232 }
  0x2d   :  { %29 = sfence }
  0x2e   :  { %30 = vsyncpa [#allocation8], 0 }
  0x2f   :  { %32 = vsyncpa [#allocation8 + $0x1], 0 }
  0x30   :  { %33 = vsyncpa [#allocation9], 0 }
  0x31   :  { %35 = vsyncpa [#allocation9 + $0x1], 0  ;;  %s871_s3 = smov 0   ;;  %s873_s18 = smov 0  }
  0x32   :  { %s875_s19 = smov 0   ;;  %s877_s20 = smov 0  }
  0x33   :  { %s879_s21 = smov 0   ;;  %s881_s22 = smov 0  }
  0x34   :  { %s883_s23 = smov 0  }
  0x35 LB: > { %s905_s24 = sadd.s32 4294967295, %s805_s23   ;;  %s512_s25 = sadd.s32 4294967294, %s805_s23   ;;  %s805_s23 = sphi %s883_s23, %s1165_s23   ;;  %s801_s22 = sphi %s881_s22, %s1164_s22   ;;  %s797_s21 = sphi %s879_s21, %s1163_s21   ;;  %s793_s20 = sphi %s877_s20, %s1162_s20   ;;  %s789_s19 = sphi %s875_s19, %s1161_s19   ;;  %s785_s18 = sphi %s873_s18, %s1160_s18   ;;  %s781_s3 = sphi %s871_s3, %s1159_s3  }
  0x36   : > { %s909_s26 = sadd.s32 1, %s805_s23   ;;  %s73_s27 = sld [smem:[#allocation4 + %s805_s23]] }
  0x37   : > { %s74_s28 = sld [smem:[#allocation4 + %s909_s26]]  ;;  %s78_s29 = sadd.s32 1, %s801_s22 }
  0x38   : > { %p85_p6 = scmp.ne.s32.totalorder %s801_s22, %s797_s21  ;;  %p86_p7 = scmp.eq.s32.totalorder %s805_s23, 0 }
  0x39   : > { %p91_p8 = scmp.ne.s32.totalorder %s797_s21, %s793_s20  ;;  %p92_p9 = scmp.eq.s32.totalorder %s905_s24, 0 }
  0x3a   : > { %p919_p10 = por %p86_p7, %p85_p6  ;;  %s122_s8 = sld [smem:[#allocation3 + %s805_s23]] }
  0x3b   : > { %p924_p11 = por %p92_p9, %p91_p8  ;;  %s123_s0 = sld [smem:[#allocation3 + %s909_s26]] }
  0x3c   : > { %s127_s1 = sadd.s32 1, %s789_s19  ;;  %p137_p12 = scmp.ne.s32.totalorder %s789_s19, %s785_s18 }
  0x3d   : > { %s1142_s9 = scalar_select %p924_p11, 1, 0 }
  0x3e   : > { %s75_s10 = ssub.s32 %s73_s27, %s74_s28  ;;  %p138_p13 = scmp.eq.s32.totalorder %s905_s24, 3 }
  0x3f   : > { %p76_p0 = scmp.eq.s32.totalorder %s75_s10, 0  ;;  %p143_p1 = scmp.ne.s32.totalorder %s785_s18, %s781_s3 }
  0x40   : > { %p935_p2 = por %p138_p13, %p137_p12  ;;  %p144_p3 = scmp.eq.s32.totalorder %s512_s25, 3 }
  0x41   : > { %s940_s12 = scalar_select %p76_p0, %s801_s22, %s78_s29  }
  0x42   : > { %s1143_s11 = scalar_select %p935_p2, 1, 0 }
  0x43   : > { %s124_s13 = ssub.s32 %s122_s8, %s123_s0  ;;  %p942_p4 = por %p144_p3, %p143_p1 }
  0x44   : > { %p125_p5 = scmp.eq.s32.totalorder %s124_s13, 0  ;;  %p566_p6 = scmp.lt.s32.totalorder %s805_s23, 4 }
  0x45   : > { %s1144_s14 = scalar_select %p942_p4, 1, 0 }
  0x46   : > { %s178_s15 = sand.u32 1, %s801_s22   ;;  %p953_p7 = pnand %p566_p6, %p919_p10 }
  0x47   : > { %s949_s16 = scalar_select %p125_p5, %s789_s19, %s127_s1  }
  0x48   : > { %s515_s17 = sshll.u32 %s178_s15, 4  ;;  %p518_p8 = scmp.ge.s32.totalorder %s805_s23, 1 }
  0x49   : > { %s548_s20 = scalar_select %p919_p10, [#allocation4], [#allocation11] }
  0x4a   : > { %s549_s25 = scalar_select %p919_p10, %s805_s23, 0 }
  0x4b   : > { %s1167_s20 = smov (!%p566_p6, %s548_s20), [#allocation13]  ;;  %s182_s28 = scalar_lea.vmem [#allocation7], %s515_s17 }
  0x4c   : > { %s1169_s25 = smov (!%p566_p6, %s549_s25), 0  ;;  %s190_s29 = sshll.u32 %s182_s28, 4  ;;  %s964_s29 = int_to_ptr.vmem [resolvable:$true] %s190_s29 }
  0x4d   : > { %s183_s27 = sld [smem:[%s1167_s20 + %s1169_s25]]  ;;  %p198_p9 = scmp.lt.s32.totalorder %s805_s23, 5 }
  0x4e   : > { %s975_s13 = scalar_lea.sflag [#allocation8], %s178_s15  ;;  %p685_p13 = pneg %p953_p7 }
  0x4f   : > { %p966_p12 = pnand %p518_p8, %p198_p9 }
  0x53   : > { %s534_s0 = sshll.u32 %s183_s27, 8  ;;  %s688_s27 = scalar_lea.hbm %s1132_s5, 1024 }
  0x54   : > { %s973_s30 = scalar_lea.hbm %s1132_s5, %s534_s0 }
  0x55   : > { %s683_s17 = scalar_lea.hbm %s973_s30, 256  ;;  %p689_p3 = scmp.lt.u32.totalorder %s973_s30, %s1132_s5 }
  0x56   : > { %p684_p10 = scmp.ne.s32.totalorder %s973_s30, %s683_s17  ;;  %p690_p5 = scmp.lt.u32.totalorder %s688_s27, %s683_s17 }
  0x57   : > { %p692_p8 = scmp.lt.u32.totalorder %s683_s17, %s973_s30 }
  0x58   : > { %p686_p0 = pnand %p685_p13, %p684_p10  ;;  %p691_p6 = por %p690_p5, %p689_p3 }
  0x5a   : > { %p687_p1 = pneg %p686_p0  ;;  %p693_p9 = por %p692_p8, %p691_p6 }
  0x5c   : > { %p694_p4 = pnand %p693_p9, %p687_p1 }
  0x5e   : > { %697 = shalt.err (!%p694_p4)
}
  0x5f   : > { %s698_s15 = scalar_lea.vmem %s964_s29, 256  ;;  %s811_s1 = smov [#allocation7]  }
  0x60   : > { %p699_p10 = scmp.ne.s32.totalorder %s964_s29, %s698_s15  ;;  %s703_s10 = sshll.u32 %s811_s1, 4  ;;  %s704_s10 = int_to_ptr.vmem [resolvable:$false] %s703_s10 }
  0x61   : > { %s705_s20 = scalar_lea.vmem %s704_s10, 512  ;;  %p706_p11 = scmp.lt.s32.totalorder %s964_s29, %s704_s10 }
  0x62   : > { %p701_p0 = pnand %p699_p10, %p685_p13  ;;  %p707_p3 = scmp.lt.s32.totalorder %s705_s20, %s698_s15 }
  0x64   : > { %p702_p2 = pneg %p701_p0  ;;  %p708_p5 = por %p707_p3, %p706_p11 }
  0x66   : > { %p709_p6 = pnand %p708_p5, %p702_p2 }
  0x68   : > { %712 = shalt.err (!%p709_p6)
}
  0x69   : > { %s812_s17 = smov 128   ;;  %s813_s25 = smov 8  }
  0x6a   : > { %561 = dma.hbm_to_vmem [thread:$0]  (!%p953_p7), %s973_s30, 256, %s964_s29, %s975_s13, %s812_s17, %s812_s17, %s813_s25  }
  0x6b   : > { %202 = sbr.rel (%p966_p12) target bundleno = 399 (0x18f), region = 32  ;;  %s204_s27 = sand.u32 (!%p966_p12), 1, %s797_s21  }
  0x6c   : > { %s1006_s28 = sshll.u32 (!%p966_p12), %s204_s27, 4  ;;  %s205_s0 = scalar_lea.sflag (!%p966_p12), [#allocation8], %s204_s27 }
  0x6d   : > { %s208_s15 = scalar_lea.vmem (!%p966_p12), [#allocation7], %s1006_s28  ;;  %p1147_p11 = scmp.ne.s32.totalorder (!%p966_p12), %s1142_s9, 0 }
  0x72   : > { %772 = dma.done.wait (%p1147_p11), %s205_s0, 256  }
  0x73   : > { %774 = vsyncadd (%p1147_p11), %s205_s0, 4294967040  ;;  %s1140_s2 = sand.u32 1, %s785_s18   ;;  %s1015_s29 = sld [smem:[#allocation5 + %s905_s24]]  ;;  %v814_v0 = vmov 0.0   ;;  %v815_v1 = vmov 0   ;;  %v268_v16 = vld [vmem:[%s208_s15] sm:$0xff]  ;;  %v251_v18 = vlaneseq }
  0x74   : > { %s1019_s8 = sshll.u32 %s1140_s2, 5  ;;  %363 = vmatprep.mubr.f32.mxu0 %v814_v0  ;;  %369 = vmatprep.mubr.f32.mxu1 %v814_v0  ;;  %s237_s30 = sld [smem:[#allocation3 + %s905_s24]]  ;;  %vm292_vm0 = vcmask 261120   ;;  %v269_v17 = vld [vmem:[%s208_s15 + $0x8] sm:$0xff] }
  0x75   : > { %634 = vset.pattern.permute.xlu0 %v815_v1  ;;  %s1023_s13 = sld [smem:[#allocation4 + %s905_s24]]  ;;  %v252_v19 = vand.u32 127, %v251_v18  ;;  %s236_s28 = scalar_lea.vmem [#allocation10], %s1019_s8 }
  0x77   : > { %v253_v21 = vadd.s32 128, %v252_v19 }
  0x79   : > { %p527_p4 = scmp.eq.s32.totalorder %s1015_s29, 0 }
  0x7a   : > { %s521_s9 = sshll.u32 %s237_s30, 1  ;;  %s249_s30 = sld [smem:[#allocation3 + %s905_s24]] }
  0x7b   : > { %p239_p2 = scmp.lt.s32.totalorder %s521_s9, 1  ;;  %s524_s1 = sshll.u32 %s1023_s13, 4 }
  0x7c   : > { %s279_s17 = scalar_lea.vmem %s1133_s6, %s524_s1 }
  0x7d   : > { %s1171_s9 = smov (!%p239_p2, %s521_s9), 1  ;;  %v280_v2 = vld [vmem:[%s279_s17] sm:$0xff]  ;;  %v281_v3 = vld [vmem:[%s279_s17 + $0x8] sm:$0xff] }
  0x7e   : > { %284 = vperm.xlu0 %634, %v280_v2   ;;  %s522_s25 = sshll.u32 %s1171_s9, 3  ;;  %s257_s9 = sld [smem:[#allocation6 + %s1023_s13]] }
  0x7f   : > { %s242_s2 = scalar_lea.vmem %s1131_s4, %s522_s25 }
  0x80   : > { %v271_v4 = vld [vmem:[%s242_s2 + $0x8] sm:$0xff]  ;;  %v273_v5 = vld [vmem:[%s242_s2 + $0x18] sm:$0xff]  ;;  %v270_v6 = vld [vmem:[%s242_s2] sm:$0xff]  ;;  %s523_s10 = sshll.u32 %s249_s30, 8 }
  0x81   : > { %v536_v7 = vpack.c.bf16 %v273_v5, %v271_v4  ;;  %v272_v8 = vld [vmem:[%s242_s2 + $0x10] sm:$0xff]  ;;  %v275_v9 = vld [vmem:[%s242_s2 + $0x28] sm:$0xff]  ;;  %v277_v10 = vld [vmem:[%s242_s2 + $0x38] sm:$0xff]  ;;  %v254_v20 = vstv %s523_s10 }
  0x82   : > { %289 = vperm.xlu0 %634, %v281_v3   ;;  %v538_v11 = vpack.c.bf16 %v272_v8, %v270_v6  ;;  %v540_v12 = vpack.c.bf16 %v277_v10, %v275_v9  ;;  %v274_v13 = vld [vmem:[%s242_s2 + $0x20] sm:$0xff]  ;;  %v276_v14 = vld [vmem:[%s242_s2 + $0x30] sm:$0xff]  ;;  %s258_s2 = sadd.s32 1, %s1023_s13  ;;  %v255_v23 = vadd.s32 %v254_v20, %v252_v19  ;;  %v256_v26 = vadd.s32 %v254_v20, %v253_v21 }
  0x83   : > { %537 = vmatprep.subr.bf16.mxu0 %v536_v7  ;;  %544 = vmatprep.subr.bf16.mxu1 %v536_v7  ;;  %v542_v15 = vpack.c.bf16 %v276_v14, %v274_v13  ;;  %s259_s1 = sld [smem:[#allocation6 + %s258_s2]] }
  0x84   : > { %539 = vmatpush1.bf16.msra.mxu0 %v538_v11  ;;  %546 = vmatpush1.bf16.msra.mxu1 %v538_v11  ;;  %v260_v24 = vstv %s257_s9 }
  0x85   : > { %541 = vmatprep.subr.bf16.mxu0 %v540_v12  ;;  %545 = vmatprep.subr.bf16.mxu1 %v540_v12  ;;  %vm1039_vm1 = vcmp.ge.s32.totalorder %v255_v23, %v260_v24  ;;  %vm1047_vm3 = vcmp.ge.s32.totalorder %v256_v26, %v260_v24 }
  0x88   : > { %543 = vmatpush1.bf16.msra.mxu0 %v542_v15  ;;  %547 = vmatpush1.bf16.msra.mxu1 %v542_v15 }
  0x89   : > { %v263_v25 = vstv %s259_s1 }
  0x8a   : > { %vm1043_vm2 = vcmp.lt.s32.totalorder %v255_v23, %v263_v25  ;;  %vm1051_vm4 = vcmp.lt.s32.totalorder %v256_v26, %v263_v25 }
  0x8b   : > { %525 = vmatmul.mubr.msk.f32.vlgmr.msra.gmra.mrb[0].mxu0 %vm292_vm0, %v268_v16  ;;  %526 = vmatmul.mubr.msk.f32.vlgmr.msra.gmra.mrb[0].mxu1 %vm292_vm0, %v269_v17  ;;  %vm266_vm5 = vmand %vm1039_vm1, %vm1043_vm2 }
  0x8c   : > { %vm267_vm6 = vmand %vm1047_vm3, %vm1051_vm4 }
  0xfd   : > { %v285_v22 = vpop.permute.xlu0 %284 }
 0x101   : > { %v290_v31 = vpop.permute.xlu0 %289 }
 0x15c   : > { %388 = sbr.rel (%p527_p4) target bundleno = 356 (0x164), region = 40 }
 0x15e   : > { %v365_v32 = vpop.f32.mrb[0].mxu0  ;;  %v371_v33 = vpop.f32.mrb[0].mxu1 }
 0x15f   : > { %v366_v34 = vadd.f32 %v365_v32, %v285_v22  ;;  %v372_v35 = vadd.f32 %v371_v33, %v290_v31  ;;  %v367_v36 = vpop.f32.mrb[1].mxu0  ;;  %v373_v37 = vpop.f32.mrb[1].mxu1 }
 0x160   : > { %v368_v38 = vadd.f32 %v367_v36, %v285_v22  ;;  %v374_v39 = vadd.f32 %v373_v37, %v290_v31 }
 0x161   : > { %v380_v40 = vsel %vm266_vm5, %v366_v34, 0.0  ;;  %v382_v41 = vsel %vm266_vm5, %v372_v35, 0.0 }
 0x162   : > { %v381_v42 = vsel %vm267_vm6, %v368_v38, 0.0  ;;  %v383_v43 = vsel %vm267_vm6, %v374_v39, 0.0  ;;  %389 = vst [vmem:[%s236_s28] sm:$0xff] (!%p527_p4), %v380_v40  ;;  %391 = vst [vmem:[%s236_s28 + $0x10] sm:$0xff] (!%p527_p4), %v382_v41 }
 0x163   : > { %390 = vst [vmem:[%s236_s28 + $0x8] sm:$0xff] %v381_v42  ;;  %392 = vst [vmem:[%s236_s28 + $0x18] sm:$0xff] %v383_v43 }
 0x164 PF: > { %s393_s15 = sld [smem:[#allocation5 + %s905_s24]] }
 0x16a   : > { %p528_p7 = scmp.ne.s32.totalorder %s393_s15, 0 }
 0x16b   : > { %v398_v44 = vld [vmem:[%s236_s28] sm:$0xff] (!%p528_p7)  ;;  %v399_v45 = vld [vmem:[%s236_s28 + $0x8] sm:$0xff] (!%p528_p7)  ;;  %v400_v46 = vld [vmem:[%s236_s28 + $0x10] sm:$0xff] (!%p528_p7) }
 0x16c   : > { %397 = sbr.rel (%p528_p7) target bundleno = 371 (0x173), region = 44  ;;  %v402_v47 = vadd.f32 (!%p528_p7), %v398_v44, %v380_v40  ;;  %v403_v48 = vadd.f32 (!%p528_p7), %v399_v45, %v381_v42  ;;  %v404_v49 = vadd.f32 (!%p528_p7), %v400_v46, %v382_v41  ;;  %v401_v50 = vld [vmem:[%s236_s28 + $0x18] sm:$0xff] (!%p528_p7) }
 0x16d   : > { %v405_v51 = vadd.f32 (!%p528_p7), %v401_v50, %v383_v43 }
 0x16e   : > { %406 = vst [vmem:[%s236_s28] sm:$0xff] (!%p528_p7), %v402_v47  ;;  %407 = vst [vmem:[%s236_s28 + $0x8] sm:$0xff] (!%p528_p7), %v403_v48 }
 0x16f   : > { %408 = vst [vmem:[%s236_s28 + $0x10] sm:$0xff] (!%p528_p7), %v404_v49  ;;  %409 = vst [vmem:[%s236_s28 + $0x18] sm:$0xff] (!%p528_p7), %v405_v51 }
 0x173 PF: > { %p1156_p12 = scmp.ne.s32.totalorder %s1143_s11, 0  ;;  %s425_s13 = sshll.u32 %s236_s28, 4  ;;  %s1071_s13 = int_to_ptr.vmem [resolvable:$true] %s425_s13 }
 0x174   : > { %s1157_s0 = sand.u32 1, %s785_s18   ;;  %s713_s2 = scalar_lea.vmem %s1071_s13, 512 }
 0x175   : > { %s552_s29 = scalar_select %p1156_p12, [#allocation3], [#allocation12] }
 0x176   : > { %s1173_s24 = smov (!%p1156_p12, %s905_s24), 0  ;;  %s1080_s30 = scalar_lea.sflag [#allocation9], %s1157_s0 }
 0x177   : > { %s418_s8 = sld [smem:[%s552_s29 + %s1173_s24]]  ;;  %p714_p13 = scmp.ne.s32.totalorder %s1071_s13, %s713_s2 }
 0x178   : > { %s816_s24 = smov [#allocation10]  }
 0x179   : > { %p715_p1 = pnand %p714_p13, %p1156_p12  ;;  %s717_s9 = sshll.u32 %s816_s24, 4  ;;  %s718_s9 = int_to_ptr.vmem [resolvable:$false] %s717_s9 }
 0x17a   : > { %s719_s1 = scalar_lea.vmem %s718_s9, 1024  ;;  %p720_p9 = scmp.lt.s32.totalorder %s1071_s13, %s718_s9 }
 0x17b   : > { %p716_p8 = pneg %p715_p1  ;;  %p721_p10 = scmp.lt.s32.totalorder %s719_s1, %s713_s2 }
 0x17d   : > { %s535_s20 = sshll.u32 %s418_s8, 8  ;;  %p722_p0 = por %p721_p10, %p720_p9 }
 0x17e   : > { %s1076_s27 = scalar_lea.hbm %s1134_s7, %s535_s20 }
 0x17f   : > { %p723_p3 = pnand %p722_p0, %p716_p8 }
 0x181   : > { %726 = shalt.err (!%p723_p3)
}
 0x182   : > { %s727_s10 = scalar_lea.hbm %s1076_s27, 512  ;;  %s731_s29 = scalar_lea.hbm %s1134_s7, 512 }
 0x183   : > { %p728_p5 = scmp.ne.s32.totalorder %s1076_s27, %s727_s10  ;;  %p732_p2 = scmp.lt.u32.totalorder %s1076_s27, %s1134_s7 }
 0x184   : > { %p733_p4 = scmp.lt.u32.totalorder %s731_s29, %s727_s10  ;;  %p735_p13 = scmp.lt.u32.totalorder %s727_s10, %s1076_s27 }
 0x185   : > { %p729_p6 = pnand %p728_p5, %p1156_p12 }
 0x186   : > { %p734_p7 = por %p733_p4, %p732_p2 }
 0x187   : > { %p730_p11 = pneg %p729_p6 }
 0x188   : > { %p736_p1 = por %p735_p13, %p734_p7 }
 0x18a   : > { %p737_p8 = pnand %p736_p1, %p730_p11 }
 0x18c   : > { %740 = shalt.err (!%p737_p8)
}
 0x18d   : > { %s817_s17 = smov 256   ;;  %s818_s25 = smov 16  }
 0x18e   : > { %554 = dma.vmem_to_hbm [thread:$0]  (%p1156_p12), %s1071_s13, 512, %s1076_s27, %s1080_s30, %s817_s17, %s817_s17, %s818_s25  }
 0x18f PF: > { %p567_p9 = scmp.ge.s32.totalorder %s805_s23, 2  ;;  %s440_s0 = sand.u32 1, %s781_s3  }
 0x190   : > { %p1158_p10 = scmp.ne.s32.totalorder %s1144_s14, 0  ;;  %s441_s2 = scalar_lea.sflag [#allocation9], %s440_s0 }
 0x192   : > { %p563_p0 = pnand %p567_p9, %p1158_p10 }
 0x194   : > { %776 = dma.done.wait (!%p563_p0), %s441_s2, 512  }
 0x195   : > { %778 = vsyncadd (!%p563_p0), %s441_s2, 4294966784  ;;  %p38_p12 = scmp.ge.s32.totalorder %s909_s26, 6   ;;  %s1159_s3 = smov %s785_s18 }
 0x196   : > { %s1160_s18 = smov %s789_s19  ;;  %s1161_s19 = smov %s949_s16 }
 0x197   : > { %s1162_s20 = smov %s797_s21  ;;  %s1163_s21 = smov %s801_s22 }
 0x198   : > { %s1164_s22 = smov %s940_s12  ;;  %s1165_s23 = smov %s909_s26 }
 0x199   :  { %40 = sbr.rel (!%p38_p12) target bundleno = 53 (0x35), region = 89 }
 0x1a0   :  { %446 = vsyncpa [#allocation8], 1 }
 0x1a1   :  { %448 = vsyncpa [#allocation8 + $0x1], 1 }
 0x1a2   :  { %449 = vsyncpa [#allocation9], 1 }
 0x1a3   :  { %451 = vsyncpa [#allocation9 + $0x1], 1 }

</bundles_post_ra>
